<compile_context>
chip_gen: v6e
topology: v6e:2x2x1
jax: 0.10.0
libtpu: 0.0.40
codegen_flags: <defaults>
</compile_context>

<pallas_src>
import functools

import jax
import jax.numpy as jnp
from jax.experimental import pallas as pl
from jax.experimental.pallas import tpu as pltpu


def _round_up(x, m):
    return ((x + m - 1) // m) * m


# ---------------------------------------------------------------------------
# Pallas kernel: fused LayerNorm (affine folded into the weights) + Linear
# ---------------------------------------------------------------------------
def _spt_ln_linear_kernel(tok_ref, w_ref, b_ref, out_ref, *, eps):
    # tok_ref: (TILE_N, D)  bf16 tokens (D = patch_dim, unpadded)
    # w_ref:   (D, dim)     bf16, LayerNorm gamma already folded in
    # b_ref:   (1, dim)     f32,  beta @ w + b
    # out_ref: (TILE_N, dim)
    x = tok_ref[...].astype(jnp.float32)

    # One-pass LayerNorm statistics in f32.
    mean = jnp.mean(x, axis=-1, keepdims=True)
    ex2 = jnp.mean(x * x, axis=-1, keepdims=True)
    var = jnp.maximum(ex2 - mean * mean, 0.0)
    inv = jax.lax.rsqrt(var + eps)
    xhat = ((x - mean) * inv).astype(w_ref.dtype)  # bf16 MXU operand

    y = jnp.dot(xhat, w_ref[...], preferred_element_type=jnp.float32) + b_ref[...]
    out_ref[...] = y.astype(out_ref.dtype)


def _choose_tile_n(n, requested):
    # Full block for tiny N; otherwise clamp so the single "parallel" grid axis has
    # at least 2 steps (v7x has 2 TensorCores) and the row tile is a multiple of 16
    # (bf16 sublane packing).
    if n <= 16:
        return n
    half = -(-n // 2)
    return max(16, min(requested, _round_up(half, 16)))


def spt_ln_linear(tokens, w_folded, b_folded, *, out_dtype, tile_n=1024, eps=1e-5):
    """tokens: (N, D) bf16 -> (N, dim) out_dtype.  Fused LayerNorm + Linear."""
    n, d = tokens.shape
    dim = w_folded.shape[1]
    tn = _choose_tile_n(n, tile_n)
    grid = (pl.cdiv(n, tn),)

    kernel = functools.partial(_spt_ln_linear_kernel, eps=eps)
    return pl.pallas_call(
        kernel,
        out_shape=jax.ShapeDtypeStruct((n, dim), out_dtype),
        grid_spec=pltpu.PrefetchScalarGridSpec(
            num_scalar_prefetch=0,
            grid=grid,
            in_specs=[
                pl.BlockSpec((tn, d), lambda i: (i, 0)),    # tokens: row-tiled, full K
                pl.BlockSpec((d, dim), lambda i: (0, 0)),   # weights: resident
                pl.BlockSpec((1, dim), lambda i: (0, 0)),   # bias:    resident
            ],
            out_specs=pl.BlockSpec((tn, dim), lambda i: (i, 0)),
        ),
        compiler_params=pltpu.CompilerParams(
            dimension_semantics=("parallel",)),
    )(tokens, w_folded, b_folded)


# ---------------------------------------------------------------------------
# Parameter preparation (done once, outside the jitted per-call path)
# ---------------------------------------------------------------------------
def spt_prepare_params(params, *, matmul_dtype=jnp.bfloat16):
    """Fold the LayerNorm affine into the projection:
       (xhat*gamma + beta) @ w + b = xhat @ (gamma[:,None]*w) + (beta @ w + b)."""
    gamma = params["gamma"].astype(jnp.float32)
    beta = params["beta"].astype(jnp.float32)
    w = params["w"].astype(jnp.float32)
    b = params["b"].astype(jnp.float32)
    w_f = (gamma[:, None] * w).astype(matmul_dtype)
    b_f = (beta @ w + b).reshape(1, -1)
    return {"w_f": w_f, "b_f": b_f}


# ---------------------------------------------------------------------------
# Plain-JAX glue, bf16 NHWC: one pad + 5 static slices + a single transpose
# ---------------------------------------------------------------------------
def _build_tokens_nhwc(x, patch_size, token_dtype=jnp.bfloat16):
    """x: (B, C, H, W) -> (B*hh*ww, p*p*5*C) tokens in bf16 (feature order p1 p2 (s c))."""
    B, C, H, W = x.shape
    p = patch_size
    hh, ww = H // p, W // p
    xh = jnp.transpose(x.astype(token_dtype), (0, 2, 3, 1))     # (B, H, W, C) bf16
    xp = jnp.pad(xh, ((0, 0), (1, 1), (1, 1), (0, 0)))          # (B, H+2, W+2, C)
    views = (
        xp[:, 1:H + 1, 1:W + 1, :],   # original
        xp[:, 1:H + 1, 0:W, :],       # F.pad(x, ( 1,-1, 0, 0)) : shift right
        xp[:, 1:H + 1, 2:W + 2, :],   # F.pad(x, (-1, 1, 0, 0)) : shift left
        xp[:, 0:H, 1:W + 1, :],       # F.pad(x, ( 0, 0, 1,-1)) : shift down
        xp[:, 2:H + 2, 1:W + 1, :],   # F.pad(x, ( 0, 0,-1, 1)) : shift up
    )
    x5 = jnp.stack(views, axis=3)                               # (B, H, W, 5, C)
    t = x5.reshape(B, hh, p, ww, p, 5 * C)                      # b h p1 w p2 (s c)
    t = jnp.transpose(t, (0, 1, 3, 2, 4, 5))                    # b h w p1 p2 (s c)
    return t.reshape(B * hh * ww, p * p * 5 * C)                # (N, patch_dim)


def spt_forward(x, prepared, *, patch_size):
    """x: (B, C, H, W) float32.  Returns (B, num_patches, dim)."""
    B, C, H, W = x.shape
    p = patch_size
    assert H % p == 0 and W % p == 0
    hh, ww = H // p, W // p
    tokens = _build_tokens_nhwc(x, p)                           # (N, patch_dim) bf16
    out = spt_ln_linear(tokens, prepared["w_f"], prepared["b_f"],
                        out_dtype=x.dtype)
    dim = prepared["w_f"].shape[1]
    return out.reshape(B, hh * ww, dim)


# ---------------------------------------------------------------------------
# Pure-JAX reference (independent NCHW path, f32 math) for correctness checking
# ---------------------------------------------------------------------------
def _pad_nchw(x, pad):
    """Mimics torch.nn.functional.pad for a 4-D NCHW tensor; negative pads crop."""
    left, right, top, bottom = pad
    x = jnp.pad(
        x,
        ((0, 0), (0, 0),
         (max(top, 0), max(bottom, 0)),
         (max(left, 0), max(right, 0))))
    H, W = x.shape[2], x.shape[3]
    return x[:, :,
             max(-top, 0): H - max(-bottom, 0),
             max(-left, 0): W - max(-right, 0)]


def spt_reference(x, params, *, patch_size):
    B, C, H, W = x.shape
    p = patch_size
    shifts = ((1, -1, 0, 0), (-1, 1, 0, 0), (0, 0, 1, -1), (0, 0, -1, 1))
    shifted = [_pad_nchw(x, s) for s in shifts]
    x5 = jnp.concatenate((x, *shifted), axis=1)
    C5 = 5 * C
    hh, ww = H // p, W // p
    t = x5.reshape(B, C5, hh, p, ww, p)
    t = jnp.transpose(t, (0, 2, 4, 3, 5, 1))
    tokens = t.reshape(B, hh * ww, p * p * C5)
    mean = jnp.mean(tokens, axis=-1, keepdims=True)
    var = jnp.mean((tokens - mean) ** 2, axis=-1, keepdims=True)
    xn = (tokens - mean) / jnp.sqrt(var + 1e-5) * params["gamma"] + params["beta"]
    return jnp.einsum("bnd,de->bne", xn, params["w"]) + params["b"]


# ---------------------------------------------------------------------------
if __name__ == "__main__":
    # Small config consistent with SPT.__init__: channels=3, patch_size=4, dim=32,
    # 16x16 input, batch 2.  patch_dim = 4*4*5*3 = 240, num_patches = 16.
    B, C, H, W = 2, 3, 16, 16
    patch_size = 4
    dim = 32
    patch_dim = patch_size * patch_size * 5 * C

    key = jax.random.PRNGKey(0)
    kx, kg, kb, kw, kbias = jax.random.split(key, 5)

    x = jax.random.normal(kx, (B, C, H, W), dtype=jnp.float32)
    params = {
        "gamma": 1.0 + 0.1 * jax.random.normal(kg, (patch_dim,), jnp.float32),
        "beta": 0.1 * jax.random.normal(kb, (patch_dim,), jnp.float32),
        "w": (jax.random.normal(kw, (patch_dim, dim), jnp.float32)
              / jnp.sqrt(patch_dim)),
        "b": 0.1 * jax.random.normal(kbias, (dim,), jnp.float32),
    }

    # LayerNorm-affine fold hoisted out of the jitted path (done once).
    prepared = spt_prepare_params(params)

    fwd = jax.jit(functools.partial(spt_forward, patch_size=patch_size))
    out = jax.block_until_ready(fwd(x, prepared))

    ref = spt_reference(x, params, patch_size=patch_size)
    assert out.shape == (B, (H // patch_size) * (W // patch_size), dim)
    # bf16 tokens + bf16 MXU operands (f32 accumulation) vs pure-f32 reference.
    assert jnp.allclose(out, ref, atol=3e-2, rtol=3e-2), "mismatch vs reference"

    print("KERNEL_OK")
</pallas_src>

<mosaic_0001>
module attributes {stable_mosaic.version = 11 : i64} {
  func.func @_spt_ln_linear_kernel(%arg0: i32, %arg1: memref<16x240xbf16, #tpu.memory_space<vmem>>, %arg2: memref<240x32xbf16, #tpu.memory_space<vmem>>, %arg3: memref<1x32xf32, #tpu.memory_space<vmem>>, %arg4: memref<16x32xf32, #tpu.memory_space<vmem>>) attributes {dimension_semantics = [#tpu.dimension_semantics<parallel>], iteration_bounds = array<i64: 2>, scalar_prefetch = 0 : i64, scratch_operands = 0 : i64, tpu.core_type = #tpu.core_type<tc>, window_params = [{transform_indices = @transform_0, window_bounds = array<i64: 16, 240>}, {pipeline_mode = #tpu.pipeline_mode<synchronous>, transform_indices = @transform_1, window_bounds = array<i64: 240, 32>}, {pipeline_mode = #tpu.pipeline_mode<synchronous>, transform_indices = @transform_2, window_bounds = array<i64: 1, 32>}, {transform_indices = @transform_3, window_bounds = array<i64: 16, 32>}]} {
    %c0 = arith.constant 0 : index
    %c0_0 = arith.constant 0 : index
    %0 = vector.load %arg1[%c0, %c0_0] : memref<16x240xbf16, #tpu.memory_space<vmem>>, vector<16x240xbf16>
    %1 = arith.extf %0 : vector<16x240xbf16> to vector<16x240xf32>
    %cst = arith.constant dense<0.000000e+00> : vector<16xf32>
    %2 = vector.multi_reduction <add>, %1, %cst [1] : vector<16x240xf32> to vector<16xf32>
    %3 = vector.shape_cast %2 : vector<16xf32> to vector<16x1xf32>
    %cst_1 = arith.constant 2.400000e+02 : f32
    %4 = vector.broadcast %cst_1 : f32 to vector<16x1xf32>
    %5 = arith.divf %3, %4 : vector<16x1xf32>
    %6 = arith.mulf %1, %1 : vector<16x240xf32>
    %cst_2 = arith.constant dense<0.000000e+00> : vector<16xf32>
    %7 = vector.multi_reduction <add>, %6, %cst_2 [1] : vector<16x240xf32> to vector<16xf32>
    %8 = vector.shape_cast %7 : vector<16xf32> to vector<16x1xf32>
    %cst_3 = arith.constant 2.400000e+02 : f32
    %9 = vector.broadcast %cst_3 : f32 to vector<16x1xf32>
    %10 = arith.divf %8, %9 : vector<16x1xf32>
    %11 = arith.mulf %5, %5 : vector<16x1xf32>
    %12 = arith.subf %10, %11 : vector<16x1xf32>
    %cst_4 = arith.constant 0.000000e+00 : f32
    %13 = vector.broadcast %cst_4 : f32 to vector<16x1xf32>
    %14 = arith.maximumf %12, %13 : vector<16x1xf32>
    %cst_5 = arith.constant 9.99999974E-6 : f32
    %15 = vector.broadcast %cst_5 : f32 to vector<16x1xf32>
    %16 = arith.addf %14, %15 : vector<16x1xf32>
    %17 = math.rsqrt %16 : vector<16x1xf32>
    %18 = vector.broadcast %5 : vector<16x1xf32> to vector<16x240xf32>
    %19 = arith.subf %1, %18 : vector<16x240xf32>
    %20 = vector.broadcast %17 : vector<16x1xf32> to vector<16x240xf32>
    %21 = arith.mulf %19, %20 : vector<16x240xf32>
    %22 = arith.truncf %21 : vector<16x240xf32> to vector<16x240xbf16>
    %c0_6 = arith.constant 0 : index
    %c0_7 = arith.constant 0 : index
    %23 = vector.load %arg2[%c0_6, %c0_7] : memref<240x32xbf16, #tpu.memory_space<vmem>>, vector<240x32xbf16>
    %cst_8 = arith.constant dense<0.000000e+00> : vector<16x32xf32>
    %24 = tpu.matmul %22, %23, %cst_8 {dimension_numbers = #tpu.dot_dimension_numbers<[1], [0], [0], [1], [0, 0, 1, 1], [], []>} : vector<16x240xbf16>, vector<240x32xbf16>, vector<16x32xf32> -> vector<16x32xf32>
    %c0_9 = arith.constant 0 : index
    %c0_10 = arith.constant 0 : index
    %25 = vector.load %arg3[%c0_9, %c0_10] : memref<1x32xf32, #tpu.memory_space<vmem>>, vector<1x32xf32>
    %26 = vector.broadcast %25 : vector<1x32xf32> to vector<16x32xf32>
    %27 = arith.addf %24, %26 : vector<16x32xf32>
    %c0_11 = arith.constant 0 : index
    %c0_12 = arith.constant 0 : index
    %28 = vector.load %arg4[%c0_11, %c0_12] : memref<16x32xf32, #tpu.memory_space<vmem>>, vector<16x32xf32>
    tpu.vector_store %arg4[%c0_11, %c0_12], %27 {strides = array<i32>} : memref<16x32xf32, #tpu.memory_space<vmem>>, vector<16x32xf32>,
    return
  }
  func.func @transform_0(%arg0: i32) -> (i32, i32) {
    %c0_i32 = arith.constant 0 : i32
    %c0_i32_0 = arith.constant 0 : i32
    return %arg0, %c0_i32 : i32, i32
  }
  func.func @transform_1(%arg0: i32) -> (i32, i32) {
    %c0_i32 = arith.constant 0 : i32
    %c0_i32_0 = arith.constant 0 : i32
    %c0_i32_1 = arith.constant 0 : i32
    return %c0_i32, %c0_i32_0 : i32, i32
  }
  func.func @transform_2(%arg0: i32) -> (i32, i32) {
    %c0_i32 = arith.constant 0 : i32
    %c0_i32_0 = arith.constant 0 : i32
    %c0_i32_1 = arith.constant 0 : i32
    return %c0_i32, %c0_i32_0 : i32, i32
  }
  func.func @transform_3(%arg0: i32) -> (i32, i32) {
    %c0_i32 = arith.constant 0 : i32
    %c0_i32_0 = arith.constant 0 : i32
    return %arg0, %c0_i32 : i32, i32
  }
}

</mosaic_0001>

<bundles_post_ra>
// kernel: spt_forward.1
= control target key start
LH: loop header
LB: loop body
LE: loop exit
PB: predicated region body
PF: predicated region fallthrough
CT: control target
= control target key end

     0   :  { %8 = vsyncpa [#allocation3], 0  ;;  %s850_s0 = inlined_call_operand.vmem [shape: bf16[32,240], index: 0, kind: input, shape index: {}]   ;;  %s851_s1 = inlined_call_operand.vmem [shape: bf16[240,32], index: 1, kind: input, shape index: {}]   ;;  %s852_s2 = inlined_call_operand.vmem [shape: f32[1,32], index: 2, kind: input, shape index: {}]   ;;  %s853_s3 = inlined_call_operand.hbm [shape: f32[32,32], index: 3, kind: output, shape index: {}]  }
   0x1   :  { %10 = vsyncpa [#allocation3 + $0x1], 0  ;;  %s657_s12 = smov 0   ;;  %s659_s13 = smov 0  }
   0x2   :  { %s661_s14 = smov 0   ;;  %s663_s15 = smov 0  }
   0x3 LB: > { %s678_s16 = sadd.s32 4294967295, %s631_s15   ;;  %s478_s17 = sadd.s32 4294967294, %s631_s15   ;;  %s631_s15 = sphi %s663_s15, %s859_s15   ;;  %s627_s14 = sphi %s661_s14, %s858_s14   ;;  %s623_s13 = sphi %s659_s13, %s857_s13   ;;  %s619_s12 = sphi %s657_s12, %s856_s12  }
   0x4   : > { %s682_s18 = sadd.s32 1, %s631_s15   ;;  %s91_s19 = sadd.s32 1, %s627_s14 }
   0x5   : > { %s88_s20 = ssub.s32 %s631_s15, %s682_s18  ;;  %p101_p0 = scmp.ne.s32.totalorder %s627_s14, %s623_s13 }
   0x6   : > { %p89_p1 = scmp.eq.s32.totalorder %s88_s20, 0  ;;  %p102_p2 = scmp.eq.s32.totalorder %s678_s16, 1 }
   0x7   : > { %p107_p3 = scmp.ne.s32.totalorder %s623_s13, %s619_s12  ;;  %p108_p4 = scmp.eq.s32.totalorder %s478_s17, 1 }
   0x8   : > { %s693_s21 = scalar_select %p89_p1, %s627_s14, %s91_s19  }
   0x9   : > { %p695_p5 = por %p102_p2, %p101_p0  ;;  %p699_p6 = por %p108_p4, %p107_p3 }
   0xa   : > { %p481_p7 = scmp.ge.s32.totalorder %s631_s15, 1  ;;  %p142_p8 = scmp.lt.s32.totalorder %s631_s15, 3 }
   0xc   : > { %p143_p9 = pnand %p481_p7, %p142_p8 }
   0xd   : > { %s483_s24 = sshll.u32 (!%p143_p9), %s678_s16, 1  ;;  %s164_s20 = sand.u32 (!%p143_p9), 1, %s623_s13  }
   0xe   : > { %146 = sbr.rel (%p143_p9) target bundleno = 412 (0x19c), region = 32  ;;  %p168_p10 = scmp.lt.s32.totalorder (!%p143_p9), %s483_s24, 3 }
   0xf   : > { %s810_s6 = scalar_lea.sflag (!%p143_p9), [#allocation3], %s164_s20 }
  0x13   : > { %v552_v0 = vld [vmem:[%s851_s1 + $0x38] sm:$0xff]   ;;  %v633_v1 = vmov 0   ;;  %v553_v2 = vld [vmem:[%s851_s1 + $0x30] sm:$0xff]   ;;  %s861_s24 = smov (!%p168_p10, %s483_s24), 3  ;;  %v554_v3 = vld [vmem:[%s851_s1 + $0x28] sm:$0xff]   ;;  %vm182_vm0 = vcmask 916480  }
  0x14   : > { %358 = vmatprep.subr.bf16.mxu0 %v633_v1  ;;  %s508_s29 = sshll.u32 %s861_s24, 3  ;;  %v555_v10 = vld [vmem:[%s851_s1 + $0x20] sm:$0xff]   ;;  %v556_v22 = vld [vmem:[%s851_s1 + $0x18] sm:$0xff]   ;;  %v557_v24 = vld [vmem:[%s851_s1 + $0x10] sm:$0xff]   ;;  %s482_s24 = sshll.u32 %s164_s20, 4  ;;  %vm399_vm1 = vcmask 261120  }
  0x15   : > { %359 = vmatpush1.bf16.msra.mxu0 %v552_v0  ;;  %s172_s5 = scalar_lea.vmem %s850_s0, %s508_s29  ;;  %v558_v25 = vld [vmem:[%s851_s1 + $0x8] sm:$0xff]   ;;  %v559_v26 = vld [vmem:[%s851_s1] sm:$0xff]   ;;  %v560_v27 = vld [vmem:[%s851_s1 + $0x70] sm:$0xff]   ;;  %s166_s27 = scalar_lea.vmem [#allocation2], %s482_s24 }
  0x16   : > { %360 = vmatprep.subr.bf16.mxu0 %v633_v1  ;;  %v176_v4 = vld [vmem:[%s172_s5] sm:$0xff]  ;;  %v177_v5 = vld [vmem:[%s172_s5 + $0x8] sm:$0xff]  ;;  %v563_v30 = vld [vmem:[%s851_s1 + $0x58] sm:$0xff]   ;;  %s416_s28 = sshll.u32 %s166_s27, 4  ;;  %s509_s29 = sshll.u32 %s678_s16, 8  ;;  %s803_s28 = int_to_ptr.vmem [resolvable:$true] %s416_s28 }
  0x17   : > { %v721_v6 = vunpack.c.l.bf16 %v176_v4  ;;  %v723_v7 = vunpack.c.h.bf16 %v176_v4  ;;  %v725_v8 = vunpack.c.l.bf16 %v177_v5  ;;  %v727_v9 = vunpack.c.h.bf16 %v177_v5  ;;  %v561_v28 = vld [vmem:[%s851_s1 + $0x68] sm:$0xff]   ;;  %v562_v29 = vld [vmem:[%s851_s1 + $0x60] sm:$0xff]   ;;  %v564_v31 = vld [vmem:[%s851_s1 + $0x50] sm:$0xff]   ;;  %s808_s5 = scalar_lea.hbm %s853_s3, %s509_s29  ;;  %s571_s7 = scalar_lea.vmem %s803_s28, 256 }
  0x18   : > { %v565_v32 = vld [vmem:[%s851_s1 + $0x48] sm:$0xff]   ;;  %v566_v33 = vld [vmem:[%s851_s1 + $0x40] sm:$0xff]   ;;  %p572_p11 = scmp.ne.s32.totalorder %s803_s28, %s571_s7  ;;  %s634_s16 = smov [#allocation2]  }
  0x19   : > { %361 = vmatpush1.bf16.msra.mxu0 %v553_v2  ;;  %v183_v11 = vsel %vm182_vm0, %v723_v7, 0.0  ;;  %v194_v12 = vmul.f32 %v721_v6, %v721_v6  ;;  %v195_v13 = vmul.f32 %v723_v7, %v723_v7  ;;  %v187_v14 = vsel %vm182_vm0, %v727_v9, 0.0  ;;  %v486_v62 = vld [vmem:[%s852_s2] ss:$0 sm:$0xff]  ;;  %s575_s8 = sshll.u32 %s634_s16, 4  ;;  %s576_s8 = int_to_ptr.vmem [resolvable:$false] %s575_s8 }
  0x1a   : > { %362 = vmatprep.subr.bf16.mxu0 %v633_v1  ;;  %v184_v15 = vadd.f32 %v183_v11, %v721_v6  ;;  %v196_v16 = vmul.f32 %v725_v8, %v725_v8  ;;  %v197_v17 = vmul.f32 %v727_v9, %v727_v9  ;;  %v188_v20 = vadd.f32 %v187_v14, %v725_v8  ;;  %p573_p12 = pnand %p572_p11, %p695_p5  ;;  %s577_s9 = scalar_lea.vmem %s576_s8, 512 }
  0x1b   : > { %v198_v18 = vsel %vm182_vm0, %v195_v13, 0.0  ;;  %p578_p0 = scmp.lt.s32.totalorder %s803_s28, %s576_s8  ;;  %p579_p1 = scmp.lt.s32.totalorder %s577_s9, %s571_s7 }
  0x1c   : > { %185 = vadd.xlane.f32.xlu0 %v184_v15  ;;  %v199_v19 = vadd.f32 %v198_v18, %v194_v12  ;;  %v202_v21 = vsel %vm182_vm0, %v197_v17, 0.0  ;;  %p574_p13 = pneg %p573_p12 }
  0x1d   : > { %363 = vmatpush1.bf16.msra.mxu0 %v554_v3  ;;  %v203_v23 = vadd.f32 %v202_v21, %v196_v16  ;;  %p580_p2 = por %p579_p1, %p578_p0 }
  0x1e   : > { %364 = vmatprep.subr.bf16.mxu0 %v633_v1  ;;  %200 = vadd.xlane.f32.xlu1 %v199_v19 }
  0x1f   : > { %p581_p3 = pnand %p580_p2, %p574_p13 }
  0x20   : > { %189 = vadd.xlane.f32.xlu0 %v188_v20 }
  0x21   : > { %365 = vmatpush1.bf16.msra.mxu0 %v555_v10 }
  0x22   : > { %366 = vmatprep.subr.bf16.mxu0 %v633_v1  ;;  %204 = vadd.xlane.f32.xlu1 %v203_v23 }
  0x25   : > { %367 = vmatpush1.bf16.msra.mxu0 %v556_v22 }
  0x26   : > { %368 = vmatprep.subr.bf16.mxu0 %v633_v1 }
  0x29   : > { %369 = vmatpush1.bf16.msra.mxu0 %v557_v24 }
  0x2a   : > { %370 = vmatprep.subr.bf16.mxu0 %v633_v1 }
  0x2d   : > { %371 = vmatpush1.bf16.msra.mxu0 %v558_v25 }
  0x2e   : > { %372 = vmatprep.subr.bf16.mxu0 %v633_v1 }
  0x31   : > { %373 = vmatpush1.bf16.msra.mxu0 %v559_v26 }
  0x32   : > { %376 = vmatprep.subr.bf16.mxu0 %v633_v1 }
  0x35   : > { %377 = vmatpush2.bf16.msra.mxu0 %v560_v27 }
  0x36   : > { %378 = vmatprep.subr.bf16.mxu0 %v633_v1 }
  0x39   : > { %379 = vmatpush2.bf16.msra.mxu0 %v561_v28 }
  0x3a   : > { %380 = vmatprep.subr.bf16.mxu0 %v633_v1 }
  0x3d   : > { %381 = vmatpush2.bf16.msra.mxu0 %v562_v29 }
  0x3e   : > { %382 = vmatprep.subr.bf16.mxu0 %v633_v1 }
  0x41   : > { %383 = vmatpush2.bf16.msra.mxu0 %v563_v30 }
  0x42   : > { %384 = vmatprep.subr.bf16.mxu0 %v633_v1 }
  0x45   : > { %385 = vmatpush2.bf16.msra.mxu0 %v564_v31 }
  0x46   : > { %386 = vmatprep.subr.bf16.mxu0 %v633_v1 }
  0x49   : > { %387 = vmatpush2.bf16.msra.mxu0 %v565_v32 }
  0x4a   : > { %388 = vmatprep.subr.bf16.mxu0 %v633_v1 }
  0x4d   : > { %389 = vmatpush2.bf16.msra.mxu0 %v566_v33 }
  0xa5   : > { %v186_v34 = vpop.xlane.xlu0 %185 }
  0xa6   : > { %v192_v35 = vmul.f32 0.004166667, %v186_v34 }
  0xa7   : > { %v201_v36 = vpop.xlane.xlu1 %200 }
  0xa8   : > { %v206_v37 = vmul.f32 0.004166667, %v201_v36  ;;  %v208_v38 = vmul.f32 %v192_v35, %v192_v35  ;;  %v218_v51 = vsub.f32 %v721_v6, %v192_v35  ;;  %v219_v52 = vsub.f32 %v723_v7, %v192_v35 }
  0xa9   : > { %v190_v39 = vpop.xlane.xlu0 %189 }
  0xaa   : > { %v210_v40 = vsub.f32 %v206_v37, %v208_v38  ;;  %v193_v41 = vmul.f32 0.004166667, %v190_v39 }
  0xab   : > { %v205_v42 = vpop.xlane.xlu1 %204 }
  0xac   : > { %v212_v43 = vmax.f32 %v210_v40, 0.0  ;;  %v207_v44 = vmul.f32 0.004166667, %v205_v42  ;;  %v209_v45 = vmul.f32 %v193_v41, %v193_v41  ;;  %v220_v53 = vsub.f32 %v725_v8, %v193_v41 }
  0xad   : > { %v221_v54 = vsub.f32 %v727_v9, %v193_v41 }
  0xae   : > { %v214_v46 = vadd.f32 1e-05, %v212_v43  ;;  %v211_v47 = vsub.f32 %v207_v44, %v209_v45 }
  0xb0   : > { %v213_v48 = vmax.f32 %v211_v47, 0.0  ;;  %567 = vrsqrt.f32 %v214_v46 }
  0xb2   : > { %v215_v49 = vadd.f32 1e-05, %v213_v48 }
  0xb4   : > { %569 = vrsqrt.f32 %v215_v49 }
  0xbd   : > { %v568_v50 = vpop.eup %567 }
  0xbe   : > { %v223_v56 = vmul.f32 %v568_v50, %v219_v52  ;;  %v222_v58 = vmul.f32 %v568_v50, %v218_v51 }
  0xc1   : > { %v570_v55 = vpop.eup %569 }
  0xc2   : > { %v225_v57 = vmul.f32 %v570_v55, %v221_v54  ;;  %v224_v59 = vmul.f32 %v570_v55, %v220_v53 }
  0xc4   : > { %v227_v60 = vpack.c.bf16 %v225_v57, %v223_v56  ;;  %v226_v61 = vpack.c.bf16 %v224_v59, %v222_v58 }
  0xc6   : > { %502 = vmatprep.mubr.msk.bf16.mxu0 %vm182_vm0, %v227_v60 }
  0xc7   : > { %391 = vmatmul.mubr.bf16.vlgmr.msra.gmra.mxu0 %v226_v61 }
 0x187   : > { %v392_v63 = vpop.f32.mrf.mxu0 }
 0x188   : > { %v393_v0 = vadd.f32 %v486_v62, %v392_v63 }
 0x189   : > { %v394_v1 = vpop.f32.mrf.mxu0 }
 0x18a   : > { %400 = vst.msk [vmem:[%s166_s27] sm:$0xff] %vm399_vm1, %v393_v0 }
 0x18b   : > { %v395_v2 = vpop.f32.mrf.mxu0 }
 0x18c   : > { %v396_v3 = vadd.f32 %v486_v62, %v395_v2 }
 0x18d   : > { %v397_v4 = vpop.f32.mrf.mxu0 }
 0x18e   : > { %401 = vst.msk [vmem:[%s166_s27 + $0x8] sm:$0xff] %vm399_vm1, %v396_v3 }
 0x18f   : > { %584 = shalt.err (!%p581_p3)
}
 0x190   : > { %s585_s10 = scalar_lea.hbm %s808_s5, 256  ;;  %s589_s19 = scalar_lea.hbm %s853_s3, 512 }
 0x191   : > { %p586_p4 = scmp.ne.s32.totalorder %s808_s5, %s585_s10  ;;  %p590_p9 = scmp.lt.s32.totalorder %s808_s5, %s853_s3 }
 0x192   : > { %p591_p10 = scmp.lt.s32.totalorder %s589_s19, %s585_s10 }
 0x193   : > { %p587_p7 = pnand %p586_p4, %p695_p5 }
 0x194   : > { %p592_p11 = por %p591_p10, %p590_p9 }
 0x195   : > { %p588_p8 = pneg %p587_p7 }
 0x197   : > { %p593_p12 = pnand %p592_p11, %p588_p8 }
 0x199   : > { %596 = shalt.err (!%p593_p12)
}
 0x19a   : > { %s635_s25 = smov 128   ;;  %s636_s26 = smov 8  }
 0x19b   : > { %510 = dma.vmem_to_hbm [thread:$0]  (%p695_p5), %s803_s28, 256, %s808_s5, %s810_s6, %s635_s25, %s635_s25, %s636_s26  }
 0x19c PF: > { %p516_p13 = scmp.ge.s32.totalorder %s631_s15, 2  ;;  %s431_s27 = sand.u32 1, %s619_s12  }
 0x19d   : > { %s432_s29 = scalar_lea.sflag [#allocation3], %s431_s27 }
 0x19e   : > { %p513_p0 = pnand %p516_p13, %p699_p6 }
 0x1a0   : > { %p514_p1 = pneg %p513_p0 }
 0x1a2   : > { %614 = dma.done.wait (%p514_p1), %s432_s29, 256  }
 0x1a3   : > { %616 = vsyncadd (%p514_p1), %s432_s29, 4294967040  ;;  %p13_p2 = scmp.ge.s32.totalorder %s682_s18, 4   ;;  %s856_s12 = smov %s623_s13 }
 0x1a4   : > { %s857_s13 = smov %s627_s14  ;;  %s858_s14 = smov %s693_s21 }
 0x1a5   : > { %s859_s15 = smov %s682_s18  ;;  %15 = sbr.rel (!%p13_p2) target bundleno = 3 (0x3), region = 67 }
 0x1aa   :  { %437 = vsyncpa [#allocation3], 1 }
 0x1ab   :  { %439 = vsyncpa [#allocation3 + $0x1], 1 }

</bundles_post_ra>
